<compile_context>
chip_gen: v5e
topology: v5e:2x2
jax: 0.10.0
libtpu: 0.0.40
codegen_flags: <defaults>
</compile_context>

<pallas_src>
import functools

import jax
import jax.numpy as jnp
from jax.experimental import pallas as pl
from jax.experimental.pallas import tpu as pltpu

EPS = 1e-6
_MIB = 1024 * 1024


def _round_up(a, b):
    return ((a + b - 1) // b) * b


def _vmem_capacity_bytes():
    """Physical VMEM per TensorCore; conservative fallback if unavailable."""
    try:
        cap = int(pltpu.get_tpu_info().vmem_capacity_bytes)
        if cap > 0:
            return cap
    except Exception:  # narrow: hardware query only (old jax / interpret mode)
        pass
    return 64 * _MIB  # v7x per-core size == smallest of v5e/v6e/v7x


def _footprint_bytes(tm, tn, H, x_bytes, w_bytes, ntiled):
    """Worst-case VMEM bytes for one pipelined grid step."""
    f = 2 * tm * H * x_bytes            # x row tile (double-buffered)
    f += 2 * tm * tn * x_bytes          # out tile (double-buffered; out dtype == x dtype)
    f += 2 * H * tn * w_bytes           # W block (2 pipeline buffers)
    f += 2 * (2 * H + tn) * 4           # a_2, b_2, bias (f32, double-buffered)
    if ntiled:
        f += 2 * tm * tn * x_bytes      # x residual slab (double-buffered)
        f += tm * H * w_bytes           # `normed` VMEM scratch (matmul dtype)
        f += 3 * tm * H * 4 + 2 * tm * tn * 4   # live f32 LN / matmul temporaries
    else:
        f += 4 * tm * H * 4             # live f32 temporaries (x, d, normed, y)
    return f


def _choose_tiles(M, H, x_bytes, w_bytes, budget):
    """Pick (tm, tn).  tn == H selects the single-axis (full-width W) kernel."""
    tm_cap = max(8, min(1024, _round_up(M, 8)))
    tms, t = [], tm_cap
    while True:
        tms.append(t)
        if t == 8:
            break
        t = max(8, _round_up(t // 2, 8))

    def pick(cands):
        # Prefer a divisor of M (no ragged last tile) unless it costs >2x tile size.
        divisors = [t for t in cands if M % t == 0 and 2 * t >= cands[0]]
        return divisors[0] if divisors else cands[0]

    # 1) full-width weight block if it fits next to the activation tiles.
    fitting = [t for t in tms
               if _footprint_bytes(t, H, H, x_bytes, w_bytes, False) <= budget]
    if fitting:
        return pick(fitting), H

    # 2) N-tile the weight / output columns (large H on small-VMEM parts, v7x).
    if H % 128 == 0:
        tn_cands = [d for d in range(H - 128, 127, -128) if H % d == 0]
        for tn in tn_cands:
            fitting = [t for t in tms
                       if _footprint_bytes(t, tn, H, x_bytes, w_bytes, True) <= budget]
            if fitting:
                return pick(fitting), tn

    # 3) last resort: smallest row tile, full width (vmem_limit is raised to
    #    cover the footprint up to physical capacity).
    return 8, H


def _even_grid_tm(M, tm):
    """If cdiv(M, tm) is odd and >= 3, shrink tm so v7x's two TensorCores get
    equal halves of the 'parallel' axis (harmless on single-core chips)."""
    gm = pl.cdiv(M, tm)
    if gm >= 3 and gm % 2 == 1:
        tm2 = max(8, _round_up(pl.cdiv(M, gm + 1), 8))
        if pl.cdiv(M, tm2) % 2 == 0:
            return tm2
    return tm


def _layer_norm_f32(x, a2, b2):
    """Annotated-transformer LayerNorm (unbiased std), f32 math."""
    H = x.shape[-1]
    mean = jnp.mean(x, axis=-1, keepdims=True)
    d = x - mean
    # torch.Tensor.std is unbiased (ddof=1).  H == 1 would be NaN in torch;
    # clamp the divisor only to avoid a trace-time ZeroDivisionError.
    var = jnp.sum(d * d, axis=-1, keepdims=True) * (1.0 / max(H - 1, 1))
    inv = pl.reciprocal(jnp.sqrt(var) + EPS, approx=False)   # per-row (tm, 1)
    return a2 * (d * inv) + b2


def _sc_kernel_full(x_ref, a2_ref, b2_ref, w_ref, bias_ref, o_ref, *, matmul_dtype):
    """Single-axis kernel: full (H, H) weight resident in VMEM."""
    x = x_ref[...].astype(jnp.float32)
    normed = _layer_norm_f32(x, a2_ref[...], b2_ref[...])
    if matmul_dtype is not None:
        normed = normed.astype(matmul_dtype)      # W was pre-cast in the wrapper
    y = jnp.dot(normed, w_ref[...], preferred_element_type=jnp.float32)
    # dropout (eval mode) == identity; bias folded into the residual store.
    o_ref[...] = (x + (y + bias_ref[...])).astype(o_ref.dtype)


def _sc_kernel_ntiled(xr_ref, xt_ref, a2_ref, b2_ref, w_ref, bias_ref, o_ref,
                      normed_ref):
    """Two-axis kernel: W tiled along its output (N) dimension."""
    j = pl.program_id(1)

    @pl.when(j == 0)
    def _():
        # LayerNorm once per row tile; reused across the W-column (j) sweep.
        x = xr_ref[...].astype(jnp.float32)
        normed_ref[...] = _layer_norm_f32(
            x, a2_ref[...], b2_ref[...]).astype(normed_ref.dtype)

    y = jnp.dot(normed_ref[...], w_ref[...], preferred_element_type=jnp.float32)
    o_ref[...] = (xt_ref[...].astype(jnp.float32)
                  + (y + bias_ref[...])).astype(o_ref.dtype)


def sublayer_connection(x, a_2, b_2, w, bias, *, matmul_dtype=jnp.bfloat16,
                        tile_override=None):
    """x: (B, S, H).  Returns x + Linear(LayerNorm(x)); dropout = eval/identity.

    matmul_dtype: dtype of the MXU operands (accumulation is always f32);
                  None keeps the matmul in the input dtype (exact f32 path).
    tile_override: optional (tm, tn) for testing; tn == H -> full-width kernel.
    """
    B, S, H = x.shape
    M = B * S

    # Pre-cast the resident weight ONCE here (not per grid step in the kernel).
    w_mx = w if matmul_dtype is None else w.astype(matmul_dtype)
    scratch_dtype = jnp.float32 if matmul_dtype is None else matmul_dtype

    x2d = x.reshape(M, H)                      # view, no HBM copy
    a2 = a_2.reshape(1, H).astype(jnp.float32)
    b2 = b_2.reshape(1, H).astype(jnp.float32)
    bias2 = bias.reshape(1, H).astype(jnp.float32)

    x_bytes = x.dtype.itemsize
    w_bytes = w_mx.dtype.itemsize

    capacity = _vmem_capacity_bytes()
    budget = int(capacity * 0.7)

    if tile_override is not None:
        tm, tn = tile_override
    else:
        tm, tn = _choose_tiles(M, H, x_bytes, w_bytes, budget)
        tm = _even_grid_tm(M, tm)
    tm = min(tm, _round_up(M, 8)) if M >= 8 else M   # tiny-M: full-dim block
    ntiled = tn != H

    # No jnp.pad / slice: a ragged last row tile (if tm does not divide M) uses
    # Pallas' boundary-block handling (OOB reads are row-local garbage, OOB
    # writes are masked on writeback).
    grid_m = pl.cdiv(M, tm)
    grid_n = pl.cdiv(H, tn)

    footprint = _footprint_bytes(tm, tn, H, x_bytes, w_bytes, ntiled)
    vmem_limit = int(min(capacity, max(footprint + 4 * _MIB, 32 * _MIB)))

    cost = pl.CostEstimate(
        flops=2 * M * H * H + 10 * M * H,
        transcendentals=2 * M,                                   # sqrt + recip / row
        bytes_accessed=(M * H * x_bytes * (3 if ntiled else 2)   # x read(s) + out write
                        + H * H * w_bytes + 3 * H * 4),
    )

    if not ntiled:
        kernel = functools.partial(_sc_kernel_full, matmul_dtype=matmul_dtype)
        grid = (grid_m,)
        in_specs = [
            pl.BlockSpec((tm, H), lambda i: (i, 0)),     # x row tile
            pl.BlockSpec((1, H), lambda i: (0, 0)),      # a_2 (LN scale)
            pl.BlockSpec((1, H), lambda i: (0, 0)),      # b_2 (LN shift)
            pl.BlockSpec((H, H), lambda i: (0, 0)),      # W (resident)
            pl.BlockSpec((1, H), lambda i: (0, 0)),      # bias
        ]
        out_specs = pl.BlockSpec((tm, H), lambda i: (i, 0))
        scratch_shapes = []
        dims = ("parallel",)
        operands = (x2d, a2, b2, w_mx, bias2)
    else:
        kernel = _sc_kernel_ntiled
        grid = (grid_m, grid_n)
        in_specs = [
            pl.BlockSpec((tm, H), lambda i, j: (i, 0)),    # x full row (LN; resident over j)
            pl.BlockSpec((tm, tn), lambda i, j: (i, j)),   # x slab for the residual
            pl.BlockSpec((1, H), lambda i, j: (0, 0)),     # a_2
            pl.BlockSpec((1, H), lambda i, j: (0, 0)),     # b_2
            pl.BlockSpec((H, tn), lambda i, j: (0, j)),    # W column block
            pl.BlockSpec((1, tn), lambda i, j: (0, j)),    # bias slab
        ]
        out_specs = pl.BlockSpec((tm, tn), lambda i, j: (i, j))
        scratch_shapes = [pltpu.VMEM((tm, H), scratch_dtype)]
        dims = ("parallel", "arbitrary")
        operands = (x2d, x2d, a2, b2, w_mx, bias2)

    out = pl.pallas_call(
        kernel,
        out_shape=jax.ShapeDtypeStruct((M, H), x.dtype),
        grid_spec=pltpu.PrefetchScalarGridSpec(
            num_scalar_prefetch=0,
            grid=grid,
            in_specs=in_specs,
            out_specs=out_specs,
            scratch_shapes=scratch_shapes,
        ),
        compiler_params=pltpu.CompilerParams(
            dimension_semantics=dims,
            vmem_limit_bytes=vmem_limit,
        ),
        cost_estimate=cost,
    )(*operands)

    return out.reshape(B, S, H)


# TODO(synk): training-mode dropout would need pltpu.prng_seed/prng_random_bits;
#             arbitrary `sublayer` callables are modeled here as Linear(size, size).


def _reference(x, a_2, b_2, w, bias):
    mean = jnp.mean(x, axis=-1, keepdims=True)
    d = x - mean
    H = x.shape[-1]
    std = jnp.sqrt(jnp.sum(d * d, axis=-1, keepdims=True) / max(H - 1, 1))
    normed = a_2 * d / (std + EPS) + b_2
    y = jnp.einsum("bsh,hk->bsk", normed, w) + bias
    return x + y


if __name__ == "__main__":
    key = jax.random.PRNGKey(0)
    B, S, H = 2, 8, 128  # batch=2, seq=8, hidden(size)=128

    kx, kw, kb = jax.random.split(key, 3)
    x = jax.random.normal(kx, (B, S, H), dtype=jnp.float32)

    a_2 = jnp.ones((H,), dtype=jnp.float32)    # LayerNorm scale
    b_2 = jnp.zeros((H,), dtype=jnp.float32)   # LayerNorm shift
    w = jax.random.normal(kw, (H, H), dtype=jnp.float32) / jnp.sqrt(H)
    bias = jax.random.normal(kb, (H,), dtype=jnp.float32) * 0.01

    ref = _reference(x, a_2, b_2, w, bias)

    # 1) exact path (f32 MXU operands) -> tight tolerance.
    out_f32 = jax.block_until_ready(
        sublayer_connection(x, a_2, b_2, w, bias, matmul_dtype=None))
    assert out_f32.shape == (B, S, H)
    assert jnp.allclose(out_f32, ref, atol=1e-4, rtol=1e-4), "f32 path mismatch"

    # 2) default path (bf16 MXU operands, f32 accumulation) -> bf16-level tolerance.
    out_bf16 = jax.block_until_ready(sublayer_connection(x, a_2, b_2, w, bias))
    assert jnp.allclose(out_bf16, ref, atol=3e-2, rtol=3e-2), "bf16 path mismatch"

    # 3) exercise the weight-N-tiled path (used when a full (H, H) W block does
    #    not fit VMEM next to the activation tiles) at a small forced shape.
    H2 = 256
    kx2, kw2, kb2 = jax.random.split(kb, 3)
    x_b = jax.random.normal(kx2, (B, S, H2), dtype=jnp.float32)
    a_2b = jnp.ones((H2,), dtype=jnp.float32)
    b_2b = jnp.zeros((H2,), dtype=jnp.float32)
    w_b = jax.random.normal(kw2, (H2, H2), dtype=jnp.float32) / jnp.sqrt(H2)
    bias_b = jax.random.normal(kb2, (H2,), dtype=jnp.float32) * 0.01
    out_nt = jax.block_until_ready(
        sublayer_connection(x_b, a_2b, b_2b, w_b, bias_b, matmul_dtype=None,
                            tile_override=(16, 128)))
    ref_b = _reference(x_b, a_2b, b_2b, w_b, bias_b)
    assert jnp.allclose(out_nt, ref_b, atol=1e-4, rtol=1e-4), "n-tiled path mismatch"

    print("KERNEL_OK")
</pallas_src>

<mosaic_0001>
module attributes {stable_mosaic.version = 11 : i64} {
  func.func @_sc_kernel_full(%arg0: i32, %arg1: memref<16x128xf32, #tpu.memory_space<vmem>>, %arg2: memref<1x128xf32, #tpu.memory_space<vmem>>, %arg3: memref<1x128xf32, #tpu.memory_space<vmem>>, %arg4: memref<128x128xf32, #tpu.memory_space<vmem>>, %arg5: memref<1x128xf32, #tpu.memory_space<vmem>>, %arg6: memref<16x128xf32, #tpu.memory_space<vmem>>) attributes {dimension_semantics = [#tpu.dimension_semantics<parallel>], iteration_bounds = array<i64: 1>, scalar_prefetch = 0 : i64, scratch_operands = 0 : i64, tpu.core_type = #tpu.core_type<tc>, window_params = [{transform_indices = @transform_0, window_bounds = array<i64: 16, 128>}, {pipeline_mode = #tpu.pipeline_mode<synchronous>, transform_indices = @transform_1, window_bounds = array<i64: 1, 128>}, {pipeline_mode = #tpu.pipeline_mode<synchronous>, transform_indices = @transform_2, window_bounds = array<i64: 1, 128>}, {pipeline_mode = #tpu.pipeline_mode<synchronous>, transform_indices = @transform_3, window_bounds = array<i64: 128, 128>}, {pipeline_mode = #tpu.pipeline_mode<synchronous>, transform_indices = @transform_4, window_bounds = array<i64: 1, 128>}, {transform_indices = @transform_5, window_bounds = array<i64: 16, 128>}]} {
    %c0 = arith.constant 0 : index
    %c0_0 = arith.constant 0 : index
    %0 = vector.load %arg1[%c0, %c0_0] : memref<16x128xf32, #tpu.memory_space<vmem>>, vector<16x128xf32>
    %c0_1 = arith.constant 0 : index
    %c0_2 = arith.constant 0 : index
    %1 = vector.load %arg2[%c0_1, %c0_2] : memref<1x128xf32, #tpu.memory_space<vmem>>, vector<1x128xf32>
    %c0_3 = arith.constant 0 : index
    %c0_4 = arith.constant 0 : index
    %2 = vector.load %arg3[%c0_3, %c0_4] : memref<1x128xf32, #tpu.memory_space<vmem>>, vector<1x128xf32>
    %cst = arith.constant dense<0.000000e+00> : vector<16xf32>
    %3 = vector.multi_reduction <add>, %0, %cst [1] : vector<16x128xf32> to vector<16xf32>
    %4 = vector.shape_cast %3 : vector<16xf32> to vector<16x1xf32>
    %cst_5 = arith.constant 1.280000e+02 : f32
    %5 = vector.broadcast %cst_5 : f32 to vector<16x1xf32>
    %6 = arith.divf %4, %5 : vector<16x1xf32>
    %7 = vector.broadcast %6 : vector<16x1xf32> to vector<16x128xf32>
    %8 = arith.subf %0, %7 : vector<16x128xf32>
    %9 = arith.mulf %8, %8 : vector<16x128xf32>
    %cst_6 = arith.constant dense<0.000000e+00> : vector<16xf32>
    %10 = vector.multi_reduction <add>, %9, %cst_6 [1] : vector<16x128xf32> to vector<16xf32>
    %11 = vector.shape_cast %10 : vector<16xf32> to vector<16x1xf32>
    %cst_7 = arith.constant 0.00787401571 : f32
    %12 = vector.broadcast %cst_7 : f32 to vector<16x1xf32>
    %13 = arith.mulf %11, %12 : vector<16x1xf32>
    %14 = math.sqrt %13 : vector<16x1xf32>
    %cst_8 = arith.constant 9.99999997E-7 : f32
    %15 = vector.broadcast %cst_8 : f32 to vector<16x1xf32>
    %16 = arith.addf %14, %15 : vector<16x1xf32>
    %17 = tpu.reciprocal %16 : vector<16x1xf32> -> vector<16x1xf32>
    %18 = vector.broadcast %17 : vector<16x1xf32> to vector<16x128xf32>
    %19 = arith.mulf %8, %18 : vector<16x128xf32>
    %20 = vector.broadcast %1 : vector<1x128xf32> to vector<16x128xf32>
    %21 = arith.mulf %20, %19 : vector<16x128xf32>
    %22 = vector.broadcast %2 : vector<1x128xf32> to vector<16x128xf32>
    %23 = arith.addf %21, %22 : vector<16x128xf32>
    %c0_9 = arith.constant 0 : index
    %c0_10 = arith.constant 0 : index
    %24 = vector.load %arg4[%c0_9, %c0_10] : memref<128x128xf32, #tpu.memory_space<vmem>>, vector<128x128xf32>
    %cst_11 = arith.constant dense<0.000000e+00> : vector<16x128xf32>
    %25 = tpu.matmul %23, %24, %cst_11 {dimension_numbers = #tpu.dot_dimension_numbers<[1], [0], [0], [1], [0, 0, 1, 1], [], []>} : vector<16x128xf32>, vector<128x128xf32>, vector<16x128xf32> -> vector<16x128xf32>
    %c0_12 = arith.constant 0 : index
    %c0_13 = arith.constant 0 : index
    %26 = vector.load %arg5[%c0_12, %c0_13] : memref<1x128xf32, #tpu.memory_space<vmem>>, vector<1x128xf32>
    %27 = vector.broadcast %26 : vector<1x128xf32> to vector<16x128xf32>
    %28 = arith.addf %25, %27 : vector<16x128xf32>
    %29 = arith.addf %0, %28 : vector<16x128xf32>
    %c0_14 = arith.constant 0 : index
    %c0_15 = arith.constant 0 : index
    %30 = vector.load %arg6[%c0_14, %c0_15] : memref<16x128xf32, #tpu.memory_space<vmem>>, vector<16x128xf32>
    tpu.vector_store %arg6[%c0_14, %c0_15], %29 {strides = array<i32>} : memref<16x128xf32, #tpu.memory_space<vmem>>, vector<16x128xf32>,
    return
  }
  func.func @transform_0(%arg0: i32) -> (i32, i32) {
    %c0_i32 = arith.constant 0 : i32
    %c0_i32_0 = arith.constant 0 : i32
    return %arg0, %c0_i32 : i32, i32
  }
  func.func @transform_1(%arg0: i32) -> (i32, i32) {
    %c0_i32 = arith.constant 0 : i32
    %c0_i32_0 = arith.constant 0 : i32
    %c0_i32_1 = arith.constant 0 : i32
    return %c0_i32, %c0_i32_0 : i32, i32
  }
  func.func @transform_2(%arg0: i32) -> (i32, i32) {
    %c0_i32 = arith.constant 0 : i32
    %c0_i32_0 = arith.constant 0 : i32
    %c0_i32_1 = arith.constant 0 : i32
    return %c0_i32, %c0_i32_0 : i32, i32
  }
  func.func @transform_3(%arg0: i32) -> (i32, i32) {
    %c0_i32 = arith.constant 0 : i32
    %c0_i32_0 = arith.constant 0 : i32
    %c0_i32_1 = arith.constant 0 : i32
    return %c0_i32, %c0_i32_0 : i32, i32
  }
  func.func @transform_4(%arg0: i32) -> (i32, i32) {
    %c0_i32 = arith.constant 0 : i32
    %c0_i32_0 = arith.constant 0 : i32
    %c0_i32_1 = arith.constant 0 : i32
    return %c0_i32, %c0_i32_0 : i32, i32
  }
  func.func @transform_5(%arg0: i32) -> (i32, i32) {
    %c0_i32 = arith.constant 0 : i32
    %c0_i32_0 = arith.constant 0 : i32
    return %arg0, %c0_i32 : i32, i32
  }
}

</mosaic_0001>

<bundles_post_ra>
// kernel: tpu_custom_call.1
= control target key start
LH: loop header
LB: loop body
LE: loop exit
PB: predicated region body
PF: predicated region fallthrough
CT: control target
= control target key end

     0   :  { %10 = vsyncpa [#allocation3], 0  ;;  %s448_s0 = inlined_call_operand.hbm [shape: f32[16,128], index: 0, kind: input, shape index: {}]   ;;  %s449_s1 = inlined_call_operand.hbm [shape: f32[1,128], index: 1, kind: input, shape index: {}]   ;;  %s450_s2 = inlined_call_operand.vmem [shape: f32[1,128], index: 2, kind: input, shape index: {}]   ;;  %s451_s3 = inlined_call_operand.hbm [shape: f32[128,128], index: 3, kind: input, shape index: {}]   ;;  %s452_s4 = inlined_call_operand.vmem [shape: f32[1,128], index: 4, kind: input, shape index: {}]   ;;  %s453_s5 = inlined_call_operand.hbm [shape: f32[16,128], index: 5, kind: output, shape index: {}]  }
   0x1   :  { %11 = vsyncpa [#allocation6], 0  ;;  %s31_s20 = sshll.u32 %s449_s1, 4  ;;  %s32_s20 = int_to_ptr.hbm [resolvable:$true] %s31_s20 }
   0x2   :  { %12 = vsyncpa [#allocation4], 0  ;;  %s364_s21 = smov [#allocation5]   ;;  %s17_s25 = sshll.u32 %s448_s0, 4  ;;  %s18_s25 = int_to_ptr.hbm [resolvable:$true] %s17_s25 }
   0x3   :  { %s33_s22 = sshll.u32 %s364_s21, 4  ;;  %s365_s26 = smov [#allocation2]   ;;  %s34_s22 = int_to_ptr.vmem [resolvable:$true] %s33_s22 }
   0x4   :  { %36 = dma.hbm_to_vmem [thread:$0]  %s32_s20, 16, %s34_s22, [#allocation6]  }
   0x5   :  { %s19_s27 = sshll.u32 %s365_s26, 4  ;;  %s366_s28 = smov 128   ;;  %s20_s27 = int_to_ptr.vmem [resolvable:$true] %s19_s27 }
   0x6   :  { %s367_s29 = smov 8   ;;  %s43_s6 = sshll.u32 %s451_s3, 4  ;;  %s44_s6 = int_to_ptr.hbm [resolvable:$true] %s43_s6 }
   0x7   :  { %25 = dma.hbm_to_vmem [thread:$0]  %s18_s25, 256, %s20_s27, [#allocation3], %s366_s28, %s366_s28, %s367_s29  }
   0x8   :  { %s368_s7 = smov [#allocation7]  }
   0x9   :  { %s45_s8 = sshll.u32 %s368_s7, 4  ;;  %s46_s8 = int_to_ptr.vmem [resolvable:$true] %s45_s8 }
   0xa   :  { %51 = dma.hbm_to_vmem [thread:$0]  %s44_s6, 2048, %s46_s8, [#allocation6], %s366_s28, %s366_s28, %s367_s29  }
   0xb   :  { %358 = dma.done.wait [#allocation3], 256  }
   0xc   :  { %359 = vsyncadd [#allocation3], 4294967040 }
   0xd   :  { %360 = dma.done.wait [#allocation6], 2064  }
   0xe   :  { %361 = vsyncadd [#allocation6], 4294965232  ;;  %v416_v0 = vld [vmem:[#allocation2] sm:$0xff]  ;;  %v419_v1 = vld [vmem:[#allocation2 + $0x8] sm:$0xff]  ;;  %v369_v2 = vmov 128.0   ;;  %s370_s10 = smov [#allocation8]  }
   0xf   :  { %70 = vadd.xlane.f32.xlu0 %v416_v0  ;;  %252 = vrcp.f32 %v369_v2  ;;  %v174_v17 = vld [vmem:[#allocation7 + $0x78] sm:$0xff]  ;;  %v173_v18 = vld [vmem:[#allocation7 + $0x70] sm:$0xff]  ;;  %v172_v19 = vld [vmem:[#allocation7 + $0x68] sm:$0xff]  ;;  %s210_s11 = sshll.u32 %s370_s10, 4  ;;  %s212_s14 = sshll.u32 %s453_s5, 4  ;;  %s211_s11 = int_to_ptr.vmem [resolvable:$true] %s210_s11  ;;  %s213_s14 = int_to_ptr.hbm [resolvable:$true] %s212_s14 }
  0x10   :  { %179 = vmatpush.msra.mxu0 %v174_v17  ;;  %226 = vmatpush.msra.mxu1 %v174_v17  ;;  %v171_v20 = vld [vmem:[#allocation7 + $0x60] sm:$0xff]  ;;  %v170_v21 = vld [vmem:[#allocation7 + $0x58] sm:$0xff]  ;;  %v169_v22 = vld [vmem:[#allocation7 + $0x50] sm:$0xff] }
  0x11   :  { %v168_v23 = vld [vmem:[#allocation7 + $0x48] sm:$0xff]  ;;  %v167_v24 = vld [vmem:[#allocation7 + $0x40] sm:$0xff]  ;;  %v166_v25 = vld [vmem:[#allocation7 + $0x38] sm:$0xff] }
  0x12   :  { %180 = vmatpush.msra.mxu0 %v173_v18  ;;  %227 = vmatpush.msra.mxu1 %v173_v18  ;;  %v165_v28 = vld [vmem:[#allocation7 + $0x30] sm:$0xff]  ;;  %v164_v29 = vld [vmem:[#allocation7 + $0x28] sm:$0xff]  ;;  %v163_v30 = vld [vmem:[#allocation7 + $0x20] sm:$0xff] }
  0x13   :  { %v162_v31 = vld [vmem:[#allocation7 + $0x18] sm:$0xff]  ;;  %v161_v35 = vld [vmem:[#allocation7 + $0x10] sm:$0xff]  ;;  %v160_v37 = vld [vmem:[#allocation7 + $0x8] sm:$0xff] }
  0x14   :  { %181 = vmatpush.msra.mxu0 %v172_v19  ;;  %228 = vmatpush.msra.mxu1 %v172_v19  ;;  %v159_v39 = vld [vmem:[#allocation7] sm:$0xff] }
  0x15   :  { %v253_v3 = vpop.eup %252 }
  0x16   :  { %v75_v4 = vmul.f32 128.0, %v253_v3  ;;  %vm79_vm0 = vweird.f32 %v253_v3  ;;  %182 = vmatpush.msra.mxu0 %v171_v20  ;;  %229 = vmatpush.msra.mxu1 %v171_v20 }
  0x17   :  { %72 = vadd.xlane.f32.xlu0 %v419_v1 }
  0x18   :  { %v76_v5 = vsub.f32 1.0, %v75_v4  ;;  %183 = vmatpush.msra.mxu0 %v170_v21  ;;  %230 = vmatpush.msra.mxu1 %v170_v21 }
  0x1a   :  { %v77_v6 = vmul.f32 %v253_v3, %v76_v5  ;;  %184 = vmatpush.msra.mxu0 %v169_v22  ;;  %231 = vmatpush.msra.mxu1 %v169_v22 }
  0x1c   :  { %v78_v7 = vadd.f32 %v253_v3, %v77_v6  ;;  %185 = vmatpush.msra.mxu0 %v168_v23  ;;  %232 = vmatpush.msra.mxu1 %v168_v23 }
  0x1e   :  { %v80_v8 = vsel %vm79_vm0, %v253_v3, %v78_v7  ;;  %186 = vmatpush.msra.mxu0 %v167_v24  ;;  %233 = vmatpush.msra.mxu1 %v167_v24  ;;  %v249_v7 = vld [vmem:[#allocation5] ss:$0 sm:$0xff] }
  0x20   :  { %187 = vmatpush.msra.mxu0 %v166_v25  ;;  %234 = vmatpush.msra.mxu1 %v166_v25 }
  0x22   :  { %188 = vmatpush.msra.mxu0 %v165_v28  ;;  %235 = vmatpush.msra.mxu1 %v165_v28 }
  0x24   :  { %189 = vmatpush.msra.mxu0 %v164_v29  ;;  %236 = vmatpush.msra.mxu1 %v164_v29 }
  0x26   :  { %190 = vmatpush.msra.mxu0 %v163_v30  ;;  %237 = vmatpush.msra.mxu1 %v163_v30 }
  0x28   :  { %191 = vmatpush.msra.mxu0 %v162_v31  ;;  %238 = vmatpush.msra.mxu1 %v162_v31 }
  0x2a   :  { %192 = vmatpush.msra.mxu0 %v161_v35  ;;  %239 = vmatpush.msra.mxu1 %v161_v35 }
  0x2c   :  { %193 = vmatpush.msra.mxu0 %v160_v37  ;;  %240 = vmatpush.msra.mxu1 %v160_v37 }
  0x2e   :  { %194 = vmatpush.msra.mxu0 %v159_v39  ;;  %241 = vmatpush.msra.mxu1 %v159_v39 }
  0x82   :  { %v71_v9 = vpop.xlane.xlu0 %70 }
  0x83   :  { %v81_v10 = vmul.f32 %v80_v8, %v71_v9 }
  0x85   :  { %v423_v11 = vsub.f32 %v416_v0, %v81_v10 }
  0x87   :  { %v85_v12 = vmul.f32 %v423_v11, %v423_v11 }
  0x89   :  { %87 = vadd.xlane.f32.xlu1 %v85_v12  ;;  %v250_v12 = vld [vmem:[%s450_s2] ss:$0 sm:$0xff] }
  0x8a   :  { %v73_v13 = vpop.xlane.xlu0 %72 }
  0x8b   :  { %v82_v14 = vmul.f32 %v80_v8, %v73_v13 }
  0x8d   :  { %v428_v15 = vsub.f32 %v419_v1, %v82_v14 }
  0x8f   :  { %v86_v16 = vmul.f32 %v428_v15, %v428_v15 }
  0x91   :  { %89 = vadd.xlane.f32.xlu1 %v86_v16 }
  0xfc   :  { %v88_v26 = vpop.xlane.xlu1 %87 }
  0xfd   :  { %v91_v27 = vmul.f32 0.007874016, %v88_v26  ;;  %v251_v26 = vld [vmem:[%s452_s4] ss:$0 sm:$0xff] }
  0xff   :  { %254 = vrsqrt.f32 %v91_v27  ;;  %vm100_vm1 = vcmp.eq.f32.partialorder %v91_v27, inf  ;;  %v103_v47 = vand.u32 2147483648, %v91_v27  ;;  %vm102_vm2 = vcmp.eq.f32.partialorder %v91_v27, 0.0 }
 0x104   :  { %v90_v32 = vpop.xlane.xlu1 %89 }
 0x105   :  { %v255_v33 = vpop.eup %254  ;;  %v92_v34 = vmul.f32 0.007874016, %v90_v32 }
 0x106   :  { %v94_v36 = vmul.f32 %v255_v33, %v91_v27 }
 0x107   :  { %256 = vrsqrt.f32 %v92_v34  ;;  %vm112_vm3 = vcmp.eq.f32.partialorder %v92_v34, inf  ;;  %v115_v55 = vand.u32 2147483648, %v92_v34  ;;  %vm114_vm4 = vcmp.eq.f32.partialorder %v92_v34, 0.0 }
 0x108   :  { %v95_v38 = vmul.f32 %v255_v33, %v94_v36 }
 0x10a   :  { %v96_v40 = vmul.f32 0.5, %v95_v38 }
 0x10c   :  { %v97_v41 = vsub.f32 1.5, %v96_v40 }
 0x10d   :  { %v257_v42 = vpop.eup %256 }
 0x10e   :  { %v98_v43 = vmul.f32 %v255_v33, %v97_v41  ;;  %v106_v44 = vmul.f32 %v257_v42, %v92_v34 }
 0x110   :  { %v99_v45 = vmul.f32 %v98_v43, %v91_v27  ;;  %v107_v46 = vmul.f32 %v257_v42, %v106_v44 }
 0x112   :  { %v108_v48 = vmul.f32 0.5, %v107_v46  ;;  %v101_v49 = vsel %vm100_vm1, %v91_v27, %v99_v45 }
 0x113   :  { %v104_v50 = vsel %vm102_vm2, %v103_v47, %v101_v49 }
 0x114   :  { %v109_v51 = vsub.f32 1.5, %v108_v48  ;;  %v117_v52 = vadd.f32 1e-06, %v104_v50 }
 0x116   :  { %v110_v53 = vmul.f32 %v257_v42, %v109_v51  ;;  %258 = vrcp.f32 %v117_v52  ;;  %v130_v62 = vand.u32 2147483648, %v117_v52  ;;  %v128_v2 = vand.u32 2147483647, %v117_v52 }
 0x117   :  { %vm124_vm6 = vweird.f32 %v117_v52 }
 0x118   :  { %v111_v54 = vmul.f32 %v110_v53, %v92_v34  ;;  %v131_v5 = vor.u32 1.1754944e-38, %v130_v62  ;;  %vm129_vm8 = vcmp.eq.f32.partialorder %v128_v2, 8.507059e+37 }
 0x11a   :  { %v113_v56 = vsel %vm112_vm3, %v92_v34, %v111_v54 }
 0x11b   :  { %v116_v57 = vsel %vm114_vm4, %v115_v55, %v113_v56 }
 0x11c   :  { %v259_v58 = vpop.eup %258  ;;  %v118_v59 = vadd.f32 1e-06, %v116_v57 }
 0x11d   :  { %v120_v60 = vmul.f32 %v259_v58, %v117_v52  ;;  %vm125_vm5 = vweird.f32 %v259_v58 }
 0x11e   :  { %260 = vrcp.f32 %v118_v59  ;;  %vm126_vm7 = vmor %vm124_vm6, %vm125_vm5  ;;  %v144_v14 = vand.u32 2147483648, %v118_v59  ;;  %v142_v18 = vand.u32 2147483647, %v118_v59  ;;  %vm138_vm10 = vweird.f32 %v118_v59 }
 0x11f   :  { %v121_v61 = vsub.f32 1.0, %v120_v60 }
 0x120   :  { %v145_v21 = vor.u32 1.1754944e-38, %v144_v14  ;;  %vm143_vm12 = vcmp.eq.f32.partialorder %v142_v18, 8.507059e+37 }
 0x121   :  { %v122_v63 = vmul.f32 %v259_v58, %v121_v61 }
 0x123   :  { %v123_v3 = vadd.f32 %v259_v58, %v122_v63 }
 0x124   :  { %v261_v4 = vpop.eup %260 }
 0x125   :  { %v127_v6 = vsel %vm126_vm7, %v259_v58, %v123_v3  ;;  %v134_v8 = vmul.f32 %v261_v4, %v118_v59  ;;  %vm139_vm9 = vweird.f32 %v261_v4 }
 0x126   :  { %v132_v9 = vsel %vm129_vm8, %v131_v5, %v127_v6  ;;  %vm140_vm11 = vmor %vm138_vm10, %vm139_vm9 }
 0x127   :  { %v147_v10 = vmul.f32 %v132_v9, %v423_v11  ;;  %v135_v13 = vsub.f32 1.0, %v134_v8 }
 0x129   :  { %v152_v16 = vmul.f32 %v249_v7, %v147_v10  ;;  %v136_v17 = vmul.f32 %v261_v4, %v135_v13 }
 0x12b   :  { %v157_v19 = vadd.f32 %v250_v12, %v152_v16  ;;  %v137_v20 = vadd.f32 %v261_v4, %v136_v17 }
 0x12d   :  { %195 = vmatmul.f32.vlgmr.msra.gmra.mxu0 %v157_v19  ;;  %v141_v22 = vsel %vm140_vm11, %v261_v4, %v137_v20 }
 0x12e   :  { %v146_v23 = vsel %vm143_vm12, %v145_v21, %v141_v22 }
 0x12f   :  { %v148_v11 = vmul.f32 %v146_v23, %v428_v15 }
 0x131   :  { %v153_v24 = vmul.f32 %v249_v7, %v148_v11 }
 0x133   :  { %v158_v25 = vadd.f32 %v250_v12, %v153_v24 }
 0x135   :  { %198 = vmatmul.f32.vlgmr.msra.gmra.mxu1 %v158_v25 }
 0x1aa   :  { %v196_v27 = vpop.f32.mrf.mxu0 }
 0x1ab   :  { %v197_v28 = vadd.f32 %v251_v26, %v196_v27 }
 0x1ad   :  { %v202_v29 = vadd.f32 %v197_v28, %v416_v0 }
 0x1af   :  { %204 = vst [vmem:[#allocation8] sm:$0xff] %v202_v29 }
 0x1b2   :  { %v199_v30 = vpop.f32.mrf.mxu1 }
 0x1b3   :  { %v200_v15 = vadd.f32 %v251_v26, %v199_v30 }
 0x1b5   :  { %v203_v31 = vadd.f32 %v200_v15, %v419_v1 }
 0x1b7   :  { %205 = vst [vmem:[#allocation8 + $0x8] sm:$0xff] %v203_v31 }
 0x1b8   :  { %218 = dma.vmem_to_hbm [thread:$0]  %s211_s11, 256, %s213_s14, [#allocation4], %s366_s28, %s366_s28, %s367_s29  }
 0x1b9   :  { %362 = dma.done.wait [#allocation4], 256  }
 0x1ba   :  { %363 = vsyncadd [#allocation4], 4294967040 }
 0x1bb   :  { %223 = vsyncpa [#allocation3], 1 }
 0x1bc   :  { %224 = vsyncpa [#allocation6], 1 }
 0x1bd   :  { %225 = vsyncpa [#allocation4], 1 }

</bundles_post_ra>
